<compile_context>
chip_gen: v7x
topology: tpu7x:2x2x1
jax: 0.10.0
libtpu: 0.0.40
codegen_flags: <defaults>
</compile_context>

<pallas_src>
import jax
import jax.numpy as jnp
from jax.experimental import pallas as pl
from jax.experimental.pallas import tpu as pltpu

LANES = 128      # vreg lane width (fast axis)
SUBLANES = 8     # f32 sublane granularity (second-to-last dim multiple)


def _round_up(v, m):
    return -(-v // m) * m


def linear11_kernel(x_ref, w_ref, b_ref, o_ref):
    # w_ref / b_ref are (1,) scalars in SMEM; scalar-vector broadcast FMA on VPU.
    o_ref[...] = x_ref[...] * w_ref[0] + b_ref[0]


def linear11(x, w, b, *, block_rows=4096, min_pallas_elems=16384):
    """Linear(1,1) forward: y = x * w + b, same shape as x.

    x: (..., 1) array (PyTorch Linear layout), w: (1,), b: (1,).
    NOTE: keeping activations lane-dense (flat (N,) / (N/128,128)) at the call
    site would avoid the (N,1) relayout entirely; we accept (...,1) to match
    the PyTorch module signature.
    """
    assert x.shape[-1] == 1, "Model uses nn.Linear(1, 1); expected trailing dim of 1"
    orig_shape = x.shape
    n = x.size

    w0 = w.reshape(-1)
    b0 = b.reshape(-1)

    # Small-N (or non-f32) bypass: one fused XLA elementwise op; the Pallas
    # path cannot beat it below ~16K elements (dispatch + per-step overhead).
    if n < min_pallas_elems or x.dtype != jnp.float32:
        return x * w0[0] + b0[0]

    flat = x.reshape(-1)
    rows = pl.cdiv(n, LANES)
    pad = rows * LANES - n

    # Tail-only padding (< 128 elements). Common case n % 128 == 0: pure reshape.
    xp = flat if pad == 0 else jnp.pad(flat, (0, pad))
    xp = xp.reshape(rows, LANES)

    # Block rows: multiple of 8 (f32 sublanes), capped by block_rows (VMEM
    # budget) and so that the grid has >= 2 blocks when possible (v7x megacore).
    if rows <= SUBLANES:
        tr = rows                        # full first dim (allowed even if not %8)
    else:
        tr = min(block_rows, rows)
        tr = min(tr, _round_up(-(-rows // 2), SUBLANES))
        tr = max(SUBLANES, (tr // SUBLANES) * SUBLANES)

    grid = (pl.cdiv(rows, tr),)          # ragged last block: OOB masked by Pallas

    y = pl.pallas_call(
        linear11_kernel,
        out_shape=jax.ShapeDtypeStruct((rows, LANES), x.dtype),
        grid_spec=pltpu.PrefetchScalarGridSpec(
            num_scalar_prefetch=0,
            grid=grid,
            in_specs=[
                pl.BlockSpec((tr, LANES), lambda i: (i, 0)),               # x tile
                pl.BlockSpec(memory_space=pltpu.MemorySpace.SMEM),         # w scalar
                pl.BlockSpec(memory_space=pltpu.MemorySpace.SMEM),         # b scalar
            ],
            out_specs=pl.BlockSpec((tr, LANES), lambda i: (i, 0)),
        ),
        compiler_params=pltpu.CompilerParams(
            dimension_semantics=("parallel",),
        ),
    )(xp, w0, b0)

    if pad == 0:
        return y.reshape(orig_shape)
    return y.reshape(-1)[:n].reshape(orig_shape)


if __name__ == "__main__":
    key = jax.random.PRNGKey(0)
    kx, kw, kb = jax.random.split(key, 3)

    # Deterministic parameters mimicking nn.Linear(1,1) init:
    # bound = 1/sqrt(in_features) = 1.0, uniform(-bound, bound).
    w = jax.random.uniform(kw, (1,), dtype=jnp.float32, minval=-1.0, maxval=1.0)
    b = jax.random.uniform(kb, (1,), dtype=jnp.float32, minval=-1.0, maxval=1.0)

    def ref(x):
        return x @ w.reshape(1, 1).T + b     # pure-JAX reference (y = x W^T + b)

    # 1) tiny batch (as the demo module uses): goes through the fused-jnp bypass.
    x_small = jax.random.normal(kx, (8, 1), dtype=jnp.float32)
    y = jax.block_until_ready(linear11(x_small, w, b))
    assert y.shape == x_small.shape
    assert jnp.allclose(y, ref(x_small), atol=1e-6, rtol=1e-6)

    # 2) same tiny batch forced through the Pallas kernel (tail-padded, 1 block).
    y = jax.block_until_ready(linear11(x_small, w, b, min_pallas_elems=0))
    assert jnp.allclose(y, ref(x_small), atol=1e-6, rtol=1e-6)

    # 3) ragged size (not a multiple of 128): tail-only pad + post-slice path.
    x_ragged = jax.random.normal(kx, (300, 1), dtype=jnp.float32)
    y = jax.block_until_ready(linear11(x_ragged, w, b, min_pallas_elems=0))
    assert jnp.allclose(y, ref(x_ragged), atol=1e-6, rtol=1e-6)

    # 4) lane-dense size (multiple of 128): no pad, no slice, multi-block grid.
    x_dense = jax.random.normal(kx, (3072, 1), dtype=jnp.float32)
    y = jax.block_until_ready(linear11(x_dense, w, b, min_pallas_elems=0))
    assert jnp.allclose(y, ref(x_dense), atol=1e-6, rtol=1e-6)

    print("KERNEL_OK")
</pallas_src>

<mosaic_0001>
module attributes {stable_mosaic.version = 11 : i64} {
  func.func @linear11_kernel(%arg0: i32, %arg1: memref<1x128xf32, #tpu.memory_space<vmem>>, %arg2: memref<1xf32, #tpu.memory_space<smem>>, %arg3: memref<1xf32, #tpu.memory_space<smem>>, %arg4: memref<1x128xf32, #tpu.memory_space<vmem>>) attributes {dimension_semantics = [#tpu.dimension_semantics<parallel>], iteration_bounds = array<i64: 1>, scalar_prefetch = 0 : i64, scratch_operands = 0 : i64, tpu.core_type = #tpu.core_type<tc>, window_params = [{transform_indices = @transform_0, window_bounds = array<i64: 1, 128>}, {transform_indices = @transform_1, window_bounds = array<i64: 1>}, {transform_indices = @transform_2, window_bounds = array<i64: 1>}, {transform_indices = @transform_3, window_bounds = array<i64: 1, 128>}]} {
    %c0 = arith.constant 0 : index
    %c0_0 = arith.constant 0 : index
    %0 = vector.load %arg1[%c0, %c0_0] : memref<1x128xf32, #tpu.memory_space<vmem>>, vector<1x128xf32>
    %c0_1 = arith.constant 0 : index
    %1 = memref.load %arg2[%c0_1] : memref<1xf32, #tpu.memory_space<smem>>
    %2 = vector.broadcast %1 : f32 to vector<1x128xf32>
    %3 = arith.mulf %0, %2 : vector<1x128xf32>
    %c0_2 = arith.constant 0 : index
    %4 = memref.load %arg3[%c0_2] : memref<1xf32, #tpu.memory_space<smem>>
    %5 = vector.broadcast %4 : f32 to vector<1x128xf32>
    %6 = arith.addf %3, %5 : vector<1x128xf32>
    %c0_3 = arith.constant 0 : index
    %c0_4 = arith.constant 0 : index
    %7 = vector.load %arg4[%c0_3, %c0_4] : memref<1x128xf32, #tpu.memory_space<vmem>>, vector<1x128xf32>
    tpu.vector_store %arg4[%c0_3, %c0_4], %6 {strides = array<i32>} : memref<1x128xf32, #tpu.memory_space<vmem>>, vector<1x128xf32>,
    return
  }
  func.func @transform_0(%arg0: i32) -> (i32, i32) {
    %c0_i32 = arith.constant 0 : i32
    %c0_i32_0 = arith.constant 0 : i32
    return %arg0, %c0_i32 : i32, i32
  }
  func.func @transform_1(%arg0: i32) -> i32 {
    %c0_i32 = arith.constant 0 : i32
    %c0_i32_0 = arith.constant 0 : i32
    return %c0_i32 : i32
  }
  func.func @transform_2(%arg0: i32) -> i32 {
    %c0_i32 = arith.constant 0 : i32
    %c0_i32_0 = arith.constant 0 : i32
    return %c0_i32 : i32
  }
  func.func @transform_3(%arg0: i32) -> (i32, i32) {
    %c0_i32 = arith.constant 0 : i32
    %c0_i32_0 = arith.constant 0 : i32
    return %arg0, %c0_i32 : i32, i32
  }
}

</mosaic_0001>

<bundles_post_ra>
// kernel: tpu_custom_call.1
= control target key start
LH: loop header
LB: loop body
LE: loop exit
PB: predicated region body
PF: predicated region fallthrough
CT: control target
= control target key end

     0   :  { %s106_s0 = inlined_call_operand.vmem [shape: f32[1,128], index: 0, kind: input, shape index: {}]   ;;  %s107_s1 = inlined_call_operand.<no memory space> [shape: f32[1], index: 1, kind: input, shape index: {}]   ;;  %s108_s2 = inlined_call_operand.<no memory space> [shape: f32[1], index: 2, kind: input, shape index: {}]   ;;  %s109_s3 = inlined_call_operand.hbm [shape: f32[1,128], index: 3, kind: output, shape index: {}]  }
   0x1   :  { %v17_v0 = vld [vmem:[%s106_s0] sm:$0x1]  ;;  %v19_v1 = vstv %s107_s1  ;;  %v22_v2 = vstv %s108_s2 }
   0x2   :  { %10 = vsyncpa [#allocation5], 0  ;;  %v20_v3 = vmul.f32 %v19_v1, %v17_v0  ;;  %s64_s18 = smov [#allocation4]  }
   0x3   :  { %s31_s19 = sshll.u32 %s64_s18, 4  ;;  %s32_s19 = int_to_ptr.vmem [resolvable:$true] %s31_s19 }
   0x4   :  { %v23_v4 = vadd.f32 %v22_v2, %v20_v3  ;;  %s40_s20 = scalar_lea.vmem %s32_s19, 16  ;;  %s44_s21 = scalar_lea.vmem %s32_s19, 32 }
   0x5   :  { %p41_p0 = scmp.ne.s32.totalorder %s32_s19, %s40_s20  ;;  %p45_p1 = scmp.lt.s32.totalorder %s32_s19, %s32_s19 }
   0x6   :  { %24 = vst [vmem:[#allocation4] sm:$0x1] %v23_v4  ;;  %p46_p2 = scmp.lt.s32.totalorder %s44_s21, %s40_s20 }
   0x8   :  { %p47_p3 = por %p46_p2, %p45_p1 }
   0xa   :  { %p48_p4 = pnand %p47_p3, %p41_p0 }
   0xc   :  { %51 = shalt.err (!%p48_p4)
}
   0xd   :  { %s52_s22 = scalar_lea.hbm %s109_s3, 16 }
   0xe   :  { %p53_p5 = scmp.ne.s32.totalorder %s109_s3, %s52_s22  ;;  %p56_p6 = scmp.lt.u32.totalorder %s52_s22, %s109_s3 }
  0x10   :  { %p58_p7 = pnand %p56_p6, %p53_p5 }
  0x12   :  { %61 = shalt.err (!%p58_p7)
}
  0x13   :  { %34 = dma.vmem_to_hbm [thread:$0]  %s32_s19, 16, %s109_s3, [#allocation5]  }
  0x14   :  { %62 = dma.done.wait [#allocation5], 16  }
  0x15   :  { %63 = vsyncadd [#allocation5], 4294967280 }
  0x16   :  { %38 = vsyncpa [#allocation5], 1 }

</bundles_post_ra>
